<compile_context>
chip_gen: v7x
topology: tpu7x:2x2x1
jax: 0.10.0
libtpu: 0.0.40
codegen_flags: <defaults>
</compile_context>

<pallas_src>
import jax
import jax.numpy as jnp
from jax.experimental import pallas as pl
from jax.experimental.pallas import tpu as pltpu


def _make_fuzzy_kernel(two_d, flatten_out, block_b, L, D):
    """Builds the per-grid-step kernel body with static config baked in."""

    def kernel(x_ref, wqT_ref, bq_ref, a_ref, b_ref, cvec_ref, wc_ref, bcr_ref,
               o_ref):
        cd = wqT_ref.dtype      # MXU dtype for projection / Fss@Wc / m@x (bf16 default)
        md = a_ref.dtype        # membership-matmul dtype (f32 default: no bf16 cancellation)

        x = x_ref[...]          # (L, D) if two_d else (block_b, L, D); dtype == cd
        # Major-dims-only reshape (free when L % 8 == 0); the 2-D path has none.
        xf = x if two_d else x.reshape(block_b * L, D)                     # (M, D)

        # --- projection: q = x @ Wq^T + bq  (one (M,D)x(D,D) MXU matmul) ---
        q = jnp.dot(xf, wqT_ref[...],
                    preferred_element_type=jnp.float32) + bq_ref[...]      # (M, D) f32

        # --- fuzzy membership via exact quadratic expansion (two MXU matmuls) ---
        z = (jnp.dot((q * q).astype(md), a_ref[...],
                     preferred_element_type=jnp.float32)
             + jnp.dot(q.astype(md), b_ref[...],
                       preferred_element_type=jnp.float32)
             + cvec_ref[...])                                              # (M, R) f32

        # --- softmax over rules (f32, stable); dropout p=0 -> identity ---
        z = z - jnp.max(z, axis=-1, keepdims=True)
        e = jnp.exp(z)
        fss = e * pl.reciprocal(jnp.sum(e, axis=-1, keepdims=True), approx=True)

        # --- out = Fss @ (Wc @ x + bc) == (Fss @ Wc) @ x + (Fss @ bc) ---
        m = jnp.dot(fss.astype(cd), wc_ref[...],
                    preferred_element_type=jnp.float32)                    # (M, L)
        offs = jnp.sum(fss * bcr_ref[...], axis=-1, keepdims=True)         # (M, 1)
        if two_d:
            # single (L,L)@(L,D) matmul, no reshape / no relayout
            out = jnp.dot(m.astype(cd), x,
                          preferred_element_type=jnp.float32) + offs       # (L, D)
        else:
            out = jnp.einsum("blm,bmd->bld",
                             m.reshape(block_b, L, L).astype(cd), x,
                             preferred_element_type=jnp.float32)
            out = out + offs.reshape(block_b, L, 1)

        o_ref[...] = out.reshape(o_ref.shape).astype(o_ref.dtype)

    return kernel


def fuzzy_attention(query, wq, bq, wc, bc, centers, widths, *,
                    block_b=None, matmul_dtype=jnp.bfloat16,
                    membership_dtype=jnp.float32, lane_dense_out=False,
                    target_steps=8):
    """Pallas TPU forward of Fuzzy_Attention (projection=True, dropout=0, value=None)."""
    B, L, D = query.shape
    R = wc.shape[0]
    out_dtype = query.dtype
    f32 = jnp.float32

    # ---- exact reformulation of the membership terms (widths > 0) ----
    iw2 = 1.0 / (widths.astype(f32) * widths.astype(f32))                  # (R, D)
    a_mat = ((-0.5 / D) * iw2.T).astype(membership_dtype)                  # (D, R)
    b_mat = ((1.0 / D) * (centers.astype(f32) * iw2).T).astype(membership_dtype)
    c_vec = ((-0.5 / D) * jnp.sum(centers.astype(f32) ** 2 * iw2, axis=-1)
             ).reshape(1, R).astype(f32)                                   # (1, R)

    # Streamed / resident MXU operands cast to the MXU dtype in HBM
    # (bf16 halves DMA bytes of the query stream and the resident Wc/Wq footprint).
    x = query.astype(matmul_dtype)                     # (B, L, D)
    wqT = wq.T.astype(matmul_dtype)                    # (D, D)
    wc_m = wc.astype(matmul_dtype)                     # (R, L)
    bq2 = bq.reshape(1, D).astype(f32)
    bcr = bc.reshape(1, R).astype(f32)

    # ---- generation-aware VMEM sizing (v5e/v6e: 128 MiB, v7x: 64 MiB per core) ----
    try:
        vmem_cap = int(pltpu.get_tpu_info().vmem_capacity_bytes)
    except Exception:
        vmem_cap = 64 * 1024 * 1024                    # conservative fallback (v7x)
    vmem_limit = int(min(vmem_cap * 3 // 4, 112 * 1024 * 1024))  # ~96 MiB v5e/v6e, ~48 MiB v7x
    work_budget = (vmem_limit * 7) // 10               # headroom for weights + scratch

    # ---- block_b: deep grid (pipelining + megacore sharding) within the budget ----
    two_d = L >= 256          # long sequences: squeezed batch dim, pure 2-D kernel
    if two_d:
        block_b = 1
    elif block_b is None:
        in_b = jnp.dtype(matmul_dtype).itemsize
        out_b = jnp.dtype(out_dtype).itemsize
        # per-batch-element per-step footprint: f32 intermediates (q, q*q, z/e/fss,
        # m, out) + double-buffered input/output blocks
        per_b = L * (3 * D + 2 * R + L) * 4 + L * D * 2 * (in_b + out_b)
        bb_budget = max(1, work_budget // per_b)
        bb_steps = max(1, B // target_steps)           # keep >= target_steps grid steps
        # Grid depth is prioritized over M = block_b*L >= 256 when B is small; for
        # production L (>= 256) the 2-D path above already gives a full-size M.
        block_b = min(B, bb_steps, bb_budget)
    block_b = int(max(1, min(block_b, B)))

    steps = int(pl.cdiv(B, block_b))
    block_b = int(pl.cdiv(B, steps))                   # rebalance to minimize padding
    b_pad = steps * block_b
    if b_pad != B:                                     # cdiv grid + zero padding
        x = jnp.pad(x, ((0, b_pad - B), (0, 0), (0, 0)))

    # Lane-dense output for narrow D (avoids masked vst); opt-in, needs L*D % 128 == 0.
    flatten_out = bool(lane_dense_out) and (D % 128 != 0) and ((L * D) % 128 == 0)

    if two_d:
        q_spec = pl.BlockSpec((None, L, D), lambda b: (b, 0, 0))   # squeezed batch dim
    else:
        q_spec = pl.BlockSpec((block_b, L, D), lambda b: (b, 0, 0))
    if flatten_out:
        out_sds = jax.ShapeDtypeStruct((b_pad, L * D), out_dtype)
        o_spec = pl.BlockSpec((block_b, L * D), lambda b: (b, 0))
    else:
        out_sds = jax.ShapeDtypeStruct((b_pad, L, D), out_dtype)
        o_spec = pl.BlockSpec((block_b, L, D), lambda b: (b, 0, 0))

    def _w(shape):
        # Constant-index weight/bias blocks (resident across the whole grid).
        # NOTE: on VMEM-tight v7x configs (large R*L Wc) these can additionally be
        # single-buffered via pipeline_mode=pl.Buffered(1); bf16 streaming already
        # halves their footprint.
        return pl.BlockSpec(shape, lambda b: (0,) * len(shape))

    kernel = _make_fuzzy_kernel(two_d, flatten_out, block_b, L, D)

    out = pl.pallas_call(
        kernel,
        out_shape=out_sds,
        grid=(steps,),
        in_specs=[
            q_spec,            # query block (streamed every step)
            _w((D, D)),        # Wq^T
            _w((1, D)),        # bq
            _w((D, R)),        # A  = -0.5/D * (1/w^2)^T
            _w((D, R)),        # Bm =  1.0/D * (c/w^2)^T
            _w((1, R)),        # c0 = -0.5/D * sum_d c^2/w^2
            _w((R, L)),        # Wc
            _w((1, R)),        # bc
        ],
        out_specs=o_spec,
        compiler_params=pltpu.CompilerParams(
            dimension_semantics=("parallel",),         # batch axis shards across TCs
            vmem_limit_bytes=vmem_limit,
        ),
    )(x, wqT, bq2, a_mat, b_mat, c_vec, wc_m, bcr)

    if flatten_out:
        out = out.reshape(b_pad, L, D)
    if b_pad != B:
        out = out[:B]
    return out


def fuzzy_attention_reference(query, wq, bq, wc, bc, centers, widths):
    """Pure-JAX reference (high-precision matmuls) of the PyTorch forward."""
    hp = jax.lax.Precision.HIGHEST
    q = jnp.dot(query, wq.T, precision=hp) + bq
    diff = jnp.abs(q[:, :, None, :] - centers[None, None])
    z = jnp.mean(-0.5 * (diff / widths[None, None]) ** 2, axis=-1)
    fss = jax.nn.softmax(z, axis=-1)
    conq = jnp.einsum("rl,bld->brd", wc, query, precision=hp) + bc[None, :, None]
    return jnp.einsum("blr,brd->bld", fss, conq, precision=hp)


if __name__ == "__main__":
    def make_inputs(key, B, L, D, R):
        ks = jax.random.split(key, 7)
        query = jax.random.normal(ks[0], (B, L, D), dtype=jnp.float32)
        wq = jax.random.normal(ks[1], (D, D), dtype=jnp.float32) * 0.1      # to_q.weight
        bq = jax.random.normal(ks[2], (D,), dtype=jnp.float32) * 0.1        # to_q.bias
        wc = jax.random.normal(ks[3], (R, L), dtype=jnp.float32) * 0.1      # to_c.weight
        bc = jax.random.normal(ks[4], (R,), dtype=jnp.float32) * 0.1        # to_c.bias
        centers = jax.random.uniform(ks[5], (R, D), dtype=jnp.float32)      # ~torch.rand
        widths = jax.random.uniform(ks[6], (R, D), dtype=jnp.float32,
                                    minval=0.1, maxval=1.0)                 # positive widths
        return query, wq, bq, wc, bc, centers, widths

    # --- small shapes (B, L, D) consistent with the module's input contract ---
    B, L, D = 8, 8, 32
    R = L                                         # n_rules defaults to L
    args = make_inputs(jax.random.PRNGKey(0), B, L, D, R)
    ref = fuzzy_attention_reference(*args)

    # f32 MXU path: strict-ish parity (tolerance covers the quadratic-expansion
    # summation reorder and the approximate EUP reciprocal in the softmax).
    out = jax.block_until_ready(fuzzy_attention(*args, matmul_dtype=jnp.float32))
    assert out.shape == (B, L, D)
    assert jnp.allclose(out, ref, atol=2e-3, rtol=2e-3), (
        f"f32 kernel mismatch, max|diff|={float(jnp.max(jnp.abs(out - ref)))}")

    # default path: bf16 MXU operands, f32 accumulation / membership / softmax.
    out_bf16 = jax.block_until_ready(fuzzy_attention(*args))
    assert out_bf16.shape == (B, L, D)
    assert float(jnp.max(jnp.abs(out_bf16 - ref))) < 0.25, "bf16 kernel sanity check failed"

    # non-divisible batch -> pl.cdiv grid + wrapper-side zero-padding path.
    Bp = 10
    args_p = make_inputs(jax.random.PRNGKey(1), Bp, L, D, R)
    ref_p = fuzzy_attention_reference(*args_p)
    out_p = jax.block_until_ready(
        fuzzy_attention(*args_p, matmul_dtype=jnp.float32, block_b=4))
    assert out_p.shape == (Bp, L, D)
    assert jnp.allclose(out_p, ref_p, atol=2e-3, rtol=2e-3), (
        f"padded-batch mismatch, max|diff|={float(jnp.max(jnp.abs(out_p - ref_p)))}")

    # long-sequence 2-D path (squeezed batch dim, block_b=1, no in-kernel reshapes).
    B2, L2, D2 = 4, 256, 128
    R2 = L2
    args_2d = make_inputs(jax.random.PRNGKey(2), B2, L2, D2, R2)
    ref_2d = fuzzy_attention_reference(*args_2d)
    out_2d = jax.block_until_ready(
        fuzzy_attention(*args_2d, matmul_dtype=jnp.float32))
    assert out_2d.shape == (B2, L2, D2)
    assert jnp.allclose(out_2d, ref_2d, atol=5e-3, rtol=5e-3), (
        f"2-D path mismatch, max|diff|={float(jnp.max(jnp.abs(out_2d - ref_2d)))}")

    print("KERNEL_OK")
</pallas_src>

<mosaic_0001>
module attributes {stable_mosaic.version = 11 : i64} {
  func.func @kernel(%arg0: i32, %arg1: memref<1x8x32xf32, #tpu.memory_space<vmem>>, %arg2: memref<32x32xf32, #tpu.memory_space<vmem>>, %arg3: memref<1x32xf32, #tpu.memory_space<vmem>>, %arg4: memref<32x8xf32, #tpu.memory_space<vmem>>, %arg5: memref<32x8xf32, #tpu.memory_space<vmem>>, %arg6: memref<1x8xf32, #tpu.memory_space<vmem>>, %arg7: memref<8x8xf32, #tpu.memory_space<vmem>>, %arg8: memref<1x8xf32, #tpu.memory_space<vmem>>, %arg9: memref<1x8x32xf32, #tpu.memory_space<vmem>>) attributes {dimension_semantics = [#tpu.dimension_semantics<parallel>], iteration_bounds = array<i64: 8>, scalar_prefetch = 0 : i64, scratch_operands = 0 : i64, tpu.core_type = #tpu.core_type<tc>, window_params = [{transform_indices = @transform_0, window_bounds = array<i64: 1, 8, 32>}, {pipeline_mode = #tpu.pipeline_mode<synchronous>, transform_indices = @transform_1, window_bounds = array<i64: 32, 32>}, {pipeline_mode = #tpu.pipeline_mode<synchronous>, transform_indices = @transform_2, window_bounds = array<i64: 1, 32>}, {pipeline_mode = #tpu.pipeline_mode<synchronous>, transform_indices = @transform_3, window_bounds = array<i64: 32, 8>}, {pipeline_mode = #tpu.pipeline_mode<synchronous>, transform_indices = @transform_4, window_bounds = array<i64: 32, 8>}, {pipeline_mode = #tpu.pipeline_mode<synchronous>, transform_indices = @transform_5, window_bounds = array<i64: 1, 8>}, {pipeline_mode = #tpu.pipeline_mode<synchronous>, transform_indices = @transform_6, window_bounds = array<i64: 8, 8>}, {pipeline_mode = #tpu.pipeline_mode<synchronous>, transform_indices = @transform_7, window_bounds = array<i64: 1, 8>}, {transform_indices = @transform_8, window_bounds = array<i64: 1, 8, 32>}]} {
    %c0 = arith.constant 0 : index
    %c0_0 = arith.constant 0 : index
    %c0_1 = arith.constant 0 : index
    %0 = vector.load %arg1[%c0, %c0_0, %c0_1] : memref<1x8x32xf32, #tpu.memory_space<vmem>>, vector<1x8x32xf32>
    %1 = vector.shape_cast %0 : vector<1x8x32xf32> to vector<8x32xf32>
    %c0_2 = arith.constant 0 : index
    %c0_3 = arith.constant 0 : index
    %2 = vector.load %arg2[%c0_2, %c0_3] : memref<32x32xf32, #tpu.memory_space<vmem>>, vector<32x32xf32>
    %cst = arith.constant dense<0.000000e+00> : vector<8x32xf32>
    %3 = tpu.matmul %1, %2, %cst {dimension_numbers = #tpu.dot_dimension_numbers<[1], [0], [0], [1], [0, 0, 1, 1], [], []>} : vector<8x32xf32>, vector<32x32xf32>, vector<8x32xf32> -> vector<8x32xf32>
    %c0_4 = arith.constant 0 : index
    %c0_5 = arith.constant 0 : index
    %4 = vector.load %arg3[%c0_4, %c0_5] : memref<1x32xf32, #tpu.memory_space<vmem>>, vector<1x32xf32>
    %5 = vector.broadcast %4 : vector<1x32xf32> to vector<8x32xf32>
    %6 = arith.addf %3, %5 : vector<8x32xf32>
    %7 = arith.mulf %6, %6 : vector<8x32xf32>
    %c0_6 = arith.constant 0 : index
    %c0_7 = arith.constant 0 : index
    %8 = vector.load %arg4[%c0_6, %c0_7] : memref<32x8xf32, #tpu.memory_space<vmem>>, vector<32x8xf32>
    %cst_8 = arith.constant dense<0.000000e+00> : vector<8x8xf32>
    %9 = tpu.matmul %7, %8, %cst_8 {dimension_numbers = #tpu.dot_dimension_numbers<[1], [0], [0], [1], [0, 0, 1, 1], [], []>} : vector<8x32xf32>, vector<32x8xf32>, vector<8x8xf32> -> vector<8x8xf32>
    %c0_9 = arith.constant 0 : index
    %c0_10 = arith.constant 0 : index
    %10 = vector.load %arg5[%c0_9, %c0_10] : memref<32x8xf32, #tpu.memory_space<vmem>>, vector<32x8xf32>
    %cst_11 = arith.constant dense<0.000000e+00> : vector<8x8xf32>
    %11 = tpu.matmul %6, %10, %cst_11 {dimension_numbers = #tpu.dot_dimension_numbers<[1], [0], [0], [1], [0, 0, 1, 1], [], []>} : vector<8x32xf32>, vector<32x8xf32>, vector<8x8xf32> -> vector<8x8xf32>
    %12 = arith.addf %9, %11 : vector<8x8xf32>
    %c0_12 = arith.constant 0 : index
    %c0_13 = arith.constant 0 : index
    %13 = vector.load %arg6[%c0_12, %c0_13] : memref<1x8xf32, #tpu.memory_space<vmem>>, vector<1x8xf32>
    %14 = vector.broadcast %13 : vector<1x8xf32> to vector<8x8xf32>
    %15 = arith.addf %12, %14 : vector<8x8xf32>
    %cst_14 = arith.constant dense<0xFF800000> : vector<8xf32>
    %16 = vector.multi_reduction <maximumf>, %15, %cst_14 [1] : vector<8x8xf32> to vector<8xf32>
    %17 = vector.shape_cast %16 : vector<8xf32> to vector<8x1xf32>
    %18 = vector.broadcast %17 : vector<8x1xf32> to vector<8x8xf32>
    %19 = arith.subf %15, %18 : vector<8x8xf32>
    %20 = math.exp %19 : vector<8x8xf32>
    %cst_15 = arith.constant dense<0.000000e+00> : vector<8xf32>
    %21 = vector.multi_reduction <add>, %20, %cst_15 [1] : vector<8x8xf32> to vector<8xf32>
    %22 = vector.shape_cast %21 : vector<8xf32> to vector<8x1xf32>
    %23 = tpu.reciprocal %22 {approx = true} : vector<8x1xf32> -> vector<8x1xf32>
    %24 = vector.broadcast %23 : vector<8x1xf32> to vector<8x8xf32>
    %25 = arith.mulf %20, %24 : vector<8x8xf32>
    %c0_16 = arith.constant 0 : index
    %c0_17 = arith.constant 0 : index
    %26 = vector.load %arg7[%c0_16, %c0_17] : memref<8x8xf32, #tpu.memory_space<vmem>>, vector<8x8xf32>
    %cst_18 = arith.constant dense<0.000000e+00> : vector<8x8xf32>
    %27 = tpu.matmul %25, %26, %cst_18 {dimension_numbers = #tpu.dot_dimension_numbers<[1], [0], [0], [1], [0, 0, 1, 1], [], []>} : vector<8x8xf32>, vector<8x8xf32>, vector<8x8xf32> -> vector<8x8xf32>
    %c0_19 = arith.constant 0 : index
    %c0_20 = arith.constant 0 : index
    %28 = vector.load %arg8[%c0_19, %c0_20] : memref<1x8xf32, #tpu.memory_space<vmem>>, vector<1x8xf32>
    %29 = vector.broadcast %28 : vector<1x8xf32> to vector<8x8xf32>
    %30 = arith.mulf %25, %29 : vector<8x8xf32>
    %cst_21 = arith.constant dense<0.000000e+00> : vector<8xf32>
    %31 = vector.multi_reduction <add>, %30, %cst_21 [1] : vector<8x8xf32> to vector<8xf32>
    %32 = vector.shape_cast %31 : vector<8xf32> to vector<8x1xf32>
    %33 = vector.shape_cast %27 : vector<8x8xf32> to vector<1x8x8xf32>
    "tpu.trace_start"() <{level = 10 : i32, message = "blm,bmd->bld"}> : () -> ()
    %cst_22 = arith.constant dense<0.000000e+00> : vector<1x8x32xf32>
    %34 = tpu.matmul %33, %0, %cst_22 {dimension_numbers = #tpu.dot_dimension_numbers<[2], [1], [1], [2], [0, 0, 0, 1, 1, 2], [0], [0]>} : vector<1x8x8xf32>, vector<1x8x32xf32>, vector<1x8x32xf32> -> vector<1x8x32xf32>
    "tpu.trace_stop"() : () -> ()
    %35 = vector.shape_cast %32 : vector<8x1xf32> to vector<1x8x1xf32>
    %36 = vector.broadcast %35 : vector<1x8x1xf32> to vector<1x8x32xf32>
    %37 = arith.addf %34, %36 : vector<1x8x32xf32>
    %c0_23 = arith.constant 0 : index
    %c0_24 = arith.constant 0 : index
    %c0_25 = arith.constant 0 : index
    %38 = vector.load %arg9[%c0_23, %c0_24, %c0_25] : memref<1x8x32xf32, #tpu.memory_space<vmem>>, vector<1x8x32xf32>
    tpu.vector_store %arg9[%c0_23, %c0_24, %c0_25], %37 {strides = array<i32>} : memref<1x8x32xf32, #tpu.memory_space<vmem>>, vector<1x8x32xf32>,
    return
  }
  func.func @transform_0(%arg0: i32) -> (i32, i32, i32) {
    %c0_i32 = arith.constant 0 : i32
    %c0_i32_0 = arith.constant 0 : i32
    %c0_i32_1 = arith.constant 0 : i32
    return %arg0, %c0_i32, %c0_i32_0 : i32, i32, i32
  }
  func.func @transform_1(%arg0: i32) -> (i32, i32) {
    %c0_i32 = arith.constant 0 : i32
    %c0_i32_0 = arith.constant 0 : i32
    %c0_i32_1 = arith.constant 0 : i32
    return %c0_i32, %c0_i32_0 : i32, i32
  }
  func.func @transform_2(%arg0: i32) -> (i32, i32) {
    %c0_i32 = arith.constant 0 : i32
    %c0_i32_0 = arith.constant 0 : i32
    %c0_i32_1 = arith.constant 0 : i32
    return %c0_i32, %c0_i32_0 : i32, i32
  }
  func.func @transform_3(%arg0: i32) -> (i32, i32) {
    %c0_i32 = arith.constant 0 : i32
    %c0_i32_0 = arith.constant 0 : i32
    %c0_i32_1 = arith.constant 0 : i32
    return %c0_i32, %c0_i32_0 : i32, i32
  }
  func.func @transform_4(%arg0: i32) -> (i32, i32) {
    %c0_i32 = arith.constant 0 : i32
    %c0_i32_0 = arith.constant 0 : i32
    %c0_i32_1 = arith.constant 0 : i32
    return %c0_i32, %c0_i32_0 : i32, i32
  }
  func.func @transform_5(%arg0: i32) -> (i32, i32) {
    %c0_i32 = arith.constant 0 : i32
    %c0_i32_0 = arith.constant 0 : i32
    %c0_i32_1 = arith.constant 0 : i32
    return %c0_i32, %c0_i32_0 : i32, i32
  }
  func.func @transform_6(%arg0: i32) -> (i32, i32) {
    %c0_i32 = arith.constant 0 : i32
    %c0_i32_0 = arith.constant 0 : i32
    %c0_i32_1 = arith.constant 0 : i32
    return %c0_i32, %c0_i32_0 : i32, i32
  }
  func.func @transform_7(%arg0: i32) -> (i32, i32) {
    %c0_i32 = arith.constant 0 : i32
    %c0_i32_0 = arith.constant 0 : i32
    %c0_i32_1 = arith.constant 0 : i32
    return %c0_i32, %c0_i32_0 : i32, i32
  }
  func.func @transform_8(%arg0: i32) -> (i32, i32, i32) {
    %c0_i32 = arith.constant 0 : i32
    %c0_i32_0 = arith.constant 0 : i32
    %c0_i32_1 = arith.constant 0 : i32
    return %arg0, %c0_i32, %c0_i32_0 : i32, i32, i32
  }
}

</mosaic_0001>

<bundles_post_ra>
// kernel: tpu_custom_call.1
= control target key start
LH: loop header
LB: loop body
LE: loop exit
PB: predicated region body
PF: predicated region fallthrough
CT: control target
= control target key end

     0   :  { %13 = vsyncpa [#allocation3], 0  ;;  %s1320_s0 = inlined_call_operand.vmem [shape: f32[8,8,32], index: 0, kind: input, shape index: {}]   ;;  %s1321_s1 = inlined_call_operand.hbm [shape: f32[32,32], index: 1, kind: input, shape index: {}]   ;;  %s1322_s2 = inlined_call_operand.vmem [shape: f32[1,32], index: 2, kind: input, shape index: {}]   ;;  %s1323_s3 = inlined_call_operand.vmem [shape: f32[32,8], index: 3, kind: input, shape index: {}]   ;;  %s1324_s4 = inlined_call_operand.vmem [shape: f32[32,8], index: 4, kind: input, shape index: {}]   ;;  %s1325_s5 = inlined_call_operand.vmem [shape: f32[1,8], index: 5, kind: input, shape index: {}]   ;;  %s1326_s6 = inlined_call_operand.vmem [shape: f32[8,8], index: 6, kind: input, shape index: {}]   ;;  %s1327_s7 = inlined_call_operand.vmem [shape: f32[1,8], index: 7, kind: input, shape index: {}]   ;;  %s1328_s8 = inlined_call_operand.hbm [shape: f32[8,8,32], index: 8, kind: output, shape index: {}]  }
   0x1   :  { %14 = vsyncpa [#allocation4], 0 }
   0x2   :  { %16 = vsyncpa [#allocation4 + $0x1], 0  ;;  %s1128_s27 = smov 0   ;;  %s1130_s28 = smov 0  }
   0x3   :  { %s1132_s29 = smov 0   ;;  %s1134_s30 = smov 0  }
   0x4 LB: > { %s1149_s9 = sadd.s32 4294967295, %s1074_s30   ;;  %s821_s10 = sadd.s32 4294967294, %s1074_s30   ;;  %s1074_s30 = sphi %s1134_s30, %s1344_s30   ;;  %s1070_s29 = sphi %s1132_s29, %s1343_s29   ;;  %s1066_s28 = sphi %s1130_s28, %s1342_s28   ;;  %s1062_s27 = sphi %s1128_s27, %s1341_s27  }
   0x5   : > { %s1153_s11 = sadd.s32 1, %s1074_s30   ;;  %s202_s12 = sadd.s32 1, %s1070_s29 }
   0x6   : > { %s199_s13 = ssub.s32 %s1074_s30, %s1153_s11  ;;  %p212_p0 = scmp.ne.s32.totalorder %s1070_s29, %s1066_s28 }
   0x7   : > { %p200_p1 = scmp.eq.s32.totalorder %s199_s13, 0  ;;  %p213_p2 = scmp.eq.s32.totalorder %s1149_s9, 7 }
   0x8   : > { %p218_p3 = scmp.ne.s32.totalorder %s1066_s28, %s1062_s27  ;;  %p219_p4 = scmp.eq.s32.totalorder %s821_s10, 7 }
   0x9   : > { %s1164_s14 = scalar_select %p200_p1, %s1070_s29, %s202_s12  }
   0xa   : > { %p1166_p5 = por %p213_p2, %p212_p0  ;;  %p1170_p6 = por %p219_p4, %p218_p3 }
   0xb   : > { %p822_p7 = scmp.ge.s32.totalorder %s1074_s30, 1  ;;  %p226_p8 = scmp.lt.s32.totalorder %s1074_s30, 9 }
   0xc   : > { %s1332_s15 = scalar_select %p1166_p5, 1, 0 }
   0xd   : > { %s1333_s16 = scalar_select %p1170_p6, 1, 0 }
   0xe   : > { %p1329_p9 = scmp.eq.s32.totalorder %s1149_s9, 0  ;;  %p1177_p10 = pnand %p822_p7, %p226_p8 }
   0xf   : > { %s1076_s18 = smov [#allocation2]   ;;  %s980_s23 = scalar_lea.hbm %s1321_s1, 512 }
  0x10   : > { %s1334_s17 = scalar_select %p1177_p10, 1, 0 }
  0x11   : > { %s238_s19 = sshll.u32 %s1076_s18, 4  ;;  %p927_p11 = pneg %p1177_p10  ;;  %s239_s19 = int_to_ptr.vmem [resolvable:$true] %s238_s19 }
  0x12   : > { %p981_p13 = scmp.ne.s32.totalorder %s1321_s1, %s980_s23  ;;  %p987_p3 = scmp.lt.u32.totalorder %s980_s23, %s1321_s1 }
  0x13   : > { %p1185_p12 = pnand %p1329_p9, %p927_p11 }
  0x15   : > { %p982_p0 = pneg %p1185_p12 }
  0x17   : > { %p983_p1 = pnand %p982_p0, %p981_p13 }
  0x19   : > { %p984_p2 = pneg %p983_p1 }
  0x1b   : > { %p989_p4 = pnand %p987_p3, %p984_p2 }
  0x1d   : > { %992 = shalt.err (!%p989_p4)
}
  0x1e   : > { %s993_s12 = scalar_lea.vmem %s239_s19, 512  ;;  %p1001_p9 = scmp.lt.s32.totalorder %s239_s19, %s239_s19 }
  0x1f   : > { %p994_p7 = scmp.ne.s32.totalorder %s239_s19, %s993_s12  ;;  %p1002_p6 = scmp.lt.s32.totalorder %s993_s12, %s993_s12 }
  0x21   : > { %p996_p8 = pnand %p994_p7, %p982_p0  ;;  %p1003_p5 = por %p1002_p6, %p1001_p9 }
  0x23   : > { %p997_p11 = pneg %p996_p8 }
  0x25   : > { %p1004_p10 = pnand %p1003_p5, %p997_p11 }
  0x27   : > { %1007 = shalt.err (!%p1004_p10)
}
  0x28   : > { %s1077_s13 = smov 128   ;;  %s1078_s18 = smov 8  }
  0x29   : > { %930 = dma.hbm_to_vmem [thread:$0]  (!%p1185_p12), %s1321_s1, 512, %s239_s19, [#allocation3], %s1077_s13, %s1077_s13, %s1078_s18  }
  0x2a   : > { %p1336_p13 = scmp.ne.s32.totalorder %s1334_s17, 0 }
  0x2b   : > { %p1337_p1 = scmp.eq.s32.totalorder (!%p1336_p13), %s1149_s9, 0 }
  0x2c   : > { %279 = sbr.rel (%p1336_p13) target bundleno = 1248 (0x4e0), region = 52 }
  0x33   : > { %1053 = dma.done.wait (%p1337_p1), [#allocation3], 512   ;;  %p1338_p0 = pmov %p1337_p1 }
  0x34   : > { %p312_p5 = scmp.lt.s32.totalorder %s1149_s9, 7  ;;  %v1079_v0 = vmov 0.0|0.0   ;;  %vm1080_vm0 = vmmov 0   ;;  %v1081_v1 = vmov 0.0   ;;  %v317_v2 = vld [vmem:[#allocation2] sm:$0xff]  ;;  %v318_v3 = vld [vmem:[#allocation2 + $0x8] sm:$0xff] }
  0x35   : > { %1055 = vsyncadd (%p1338_p0), [#allocation3], 4294966784  ;;  %903 = vmatprep.subr.bf16.mxu0 %v1079_v0  ;;  %868 = vmatprep.mubr.msk.f32.mxu0 %vm1080_vm0, %v1081_v1  ;;  %v319_v4 = vld [vmem:[#allocation2 + $0x10] sm:$0xff]  ;;  %v904_v5 = vpack.c.bf16 %v318_v3, %v317_v2  ;;  %v320_v6 = vld [vmem:[#allocation2 + $0x18] sm:$0xff]  ;;  %vm328_vm1 = vcmask 261120   ;;  %vm565_vm2 = vcmask 64512  }
  0x36   : > { %909 = vmatprep.subr.bf16.mxu1 %v1079_v0  ;;  %879 = vmatprep.mubr.msk.f32.mxu1 %vm1080_vm0, %v1081_v1  ;;  %s313_s17 = scalar_select %p312_p5, %s1149_s9, 7  ;;  %v407_v7 = vld [vmem:[%s1324_s4] sm:$0xff]  ;;  %v408_v8 = vld [vmem:[%s1324_s4 + $0x8] sm:$0xff]  ;;  %v907_v9 = vpack.c.bf16 %v320_v6, %v319_v4  ;;  %v409_v15 = vld [vmem:[%s1324_s4 + $0x10] sm:$0xff] }
  0x37   : > { %905 = vmatpush3.bf16.msra.mxu0 %v904_v5  ;;  %v910_v10 = vpack.c.bf16 %v408_v8, %v407_v7  ;;  %v403_v11 = vld [vmem:[%s1323_s3] sm:$0xff]  ;;  %v404_v12 = vld [vmem:[%s1323_s3 + $0x8] sm:$0xff]  ;;  %v410_v16 = vld [vmem:[%s1324_s4 + $0x18] sm:$0xff]  ;;  %s309_s23 = sand.u32 1, %s1066_s28   ;;  %s838_s25 = sshll.u32 %s1149_s9, 7 }
  0x38   : > { %s828_s19 = sshll.u32 %s313_s17, 3  ;;  %906 = vmatprep.subr.bf16.mxu0 %v1079_v0  ;;  %v916_v14 = vpack.c.bf16 %v404_v12, %v403_v11  ;;  %v913_v17 = vpack.c.bf16 %v410_v16, %v409_v15  ;;  %v405_v18 = vld [vmem:[%s1323_s3 + $0x10] sm:$0xff]  ;;  %v406_v19 = vld [vmem:[%s1323_s3 + $0x18] sm:$0xff]  ;;  %v829_v21 = vld [vmem:[%s1322_s2] ss:$0 sm:$0xff]  ;;  %s827_s24 = sshll.u32 %s309_s23, 3 }
  0x39   : > { %s315_s12 = scalar_lea.vmem %s1320_s0, %s828_s19  ;;  %911 = vmatpush3.bf16.msra.mxu1 %v910_v10  ;;  %v919_v20 = vpack.c.bf16 %v406_v19, %v405_v18  ;;  %v833_v29 = vld [vmem:[%s1325_s5] ss:$0 sm:$0xff]  ;;  %s311_s26 = scalar_lea.vmem [#allocation5], %s827_s24 }
  0x3a   : > { %912 = vmatprep.subr.bf16.mxu1 %v1079_v0  ;;  %v316_v13 = vld [vmem:[%s315_s12] sm:$0xff]  ;;  %s750_s10 = sshll.u32 %s311_s26, 4  ;;  %s1277_s18 = scalar_lea.hbm %s1328_s8, %s838_s25  ;;  %s1279_s10 = int_to_ptr.vmem [resolvable:$true] %s750_s10 }
  0x3b   : > { %908 = vmatpush3.bf16.msra.mxu0 %v907_v9  ;;  %v577_v39 = vld [vmem:[%s1326_s6] sm:$0xff]  ;;  %s737_s21 = scalar_lea.sflag [#allocation4], %s309_s23  ;;  %s1008_s9 = scalar_lea.vmem %s1279_s10, 128 }
  0x3c   : > { %915 = vmatprep.subr.bf16.mxu0 %v1079_v0  ;;  %v835_v42 = vld [vmem:[%s1327_s7] ss:$0 sm:$0xff]  ;;  %p1009_p6 = scmp.ne.s32.totalorder %s1279_s10, %s1008_s9  ;;  %p1339_p9 = scmp.ne.s32.totalorder %s1332_s15, 0 }
  0x3d   : > { %914 = vmatpush3.bf16.msra.mxu1 %v913_v17  ;;  %s1082_s22 = smov [#allocation5]  }
  0x3e   : > { %869 = vmatmul.mubr.msk.f32.vlgmr.msra.gmra.mrb[0].mxu0 %vm328_vm1, %v316_v13  ;;  %893 = vmatprep.subr.mxu1 %v1081_v1  ;;  %p1010_p10 = pnand %p1009_p6, %p1339_p9  ;;  %s1012_s17 = sshll.u32 %s1082_s22, 4  ;;  %s1013_s17 = int_to_ptr.vmem [resolvable:$false] %s1012_s17 }
  0x3f   : > { %917 = vmatpush3.bf16.msra.mxu0 %v916_v14  ;;  %890 = vmatprep.mubr.msk.f32.mxu0 %vm1080_vm0, %v1081_v1  ;;  %s1014_s19 = scalar_lea.vmem %s1013_s17, 256  ;;  %p1015_p2 = scmp.lt.s32.totalorder %s1279_s10, %s1013_s17 }
  0x40   : > { %918 = vmatprep.subr.bf16.mxu0 %v1079_v0  ;;  %p1011_p12 = pneg %p1010_p10  ;;  %p1016_p3 = scmp.lt.s32.totalorder %s1014_s19, %s1008_s9 }
  0x42   : > { %p1017_p4 = por %p1016_p3, %p1015_p2 }
  0x43   : > { %920 = vmatpush3.bf16.msra.mxu0 %v919_v20 }
  0x44   : > { %p1018_p7 = pnand %p1017_p4, %p1011_p12 }
 0x111   : > { %v398_v22 = vpop.f32.mrb[0].mxu0 }
 0x112   : > { %v399_v23 = vadd.f32 %v829_v21, %v398_v22  ;;  %v870_v24 = vpop.f32.mrb[1].mxu0 }
 0x114   : > { %v402_v25 = vmul.f32 %v399_v23, %v399_v23  ;;  %880 = vmatmul.mubr.msk.f32.vlgmr.msra.gmra.mrb[0].mxu1 %vm328_vm1, %v399_v23 }
 0x115   : > { %895 = vmatprep.mubr.msk.f32.mxu1 %vm1080_vm0, %v1081_v1  ;;  %894 = vmatpush3.msra.mxu1 %v577_v39 }
 0x116   : > { %891 = vmatmul.mubr.msk.f32.vlgmr.msra.gmra.mrb[2].mxu0 %vm328_vm1, %v402_v25  ;;  %898 = vmatprep.subr.mxu1 %v1081_v1 }
 0x1e7   : > { %v480_v26 = vpop.f32.mrb[0].mxu1 }
 0x1e8   : > { %v881_v27 = vpop.f32.mrb[1].mxu1 }
 0x1e9   : > { %v553_v28 = vpop.f32.mrb[2].mxu0 }
 0x1ea   : > { %v554_v30 = vadd.f32 %v553_v28, %v480_v26  ;;  %v892_v31 = vpop.f32.mrb[3].mxu0 }
 0x1ec   : > { %v564_v32 = vadd.f32 %v833_v29, %v554_v30 }
 0x1ee   : > { %v566_v33 = vsel %vm565_vm2, %v564_v32, -inf }
 0x1ef   : > { %567 = vmax.xlane.f32.xlu0 %v566_v33 }
 0x27c   : > { %v568_v34 = vpop.xlane.xlu0 %567 }
 0x27d   : > { %v569_v35 = vsub.f32 %v564_v32, %v568_v34 }
 0x27f   : > { %v570_v36 = vmul.f32 1.442695, %v569_v35 }
 0x281   : > { %976 = vpow2.f32 %v570_v36 }
 0x28b   : > { %v977_v37 = vpop.eup %976 }
 0x28c   : > { %v572_v38 = vsel %vm565_vm2, %v977_v37, 0.0 }
 0x28d   : > { %573 = vadd.xlane.f32.xlu0 %v572_v38 }
 0x31a   : > { %v574_v40 = vpop.xlane.xlu0 %573 }
 0x31b   : > { %978 = vrcp.f32 %v574_v40 }
 0x325   : > { %v979_v41 = vpop.eup %978 }
 0x326   : > { %v576_v43 = vmul.f32 %v979_v41, %v977_v37 }
 0x328   : > { %896 = vmatmul.mubr.msk.f32.vlgmr.msra.gmra.mrb[2].mxu1 %vm565_vm2, %v576_v43  ;;  %v658_v44 = vmul.f32 %v835_v42, %v576_v43 }
 0x329   : > { %899 = vmatpush3.msra.mxu1 %v316_v13  ;;  %900 = vmatprep.mubr.msk.f32.mxu1 %vm1080_vm0, %v1081_v1 }
 0x32a   : > { %v659_v45 = vsel %vm565_vm2, %v658_v44, 0.0 }
 0x32b   : > { %660 = vadd.xlane.f32.xlu1 %v659_v45 }
 0x3b8   : > { %v661_v48 = vpop.xlane.xlu1 %660 }
 0x3fb   : > { %v647_v46 = vpop.f32.mrb[2].mxu1 }
 0x3fc   : > { %v897_v47 = vpop.f32.mrb[3].mxu1  ;;  %901 = vmatmul.mubr.msk.f32.vlgmr.msra.gmra.mrb[4].mxu1 %vm565_vm2, %v647_v46 }
 0x4cf   : > { %v731_v49 = vpop.f32.mrb[4].mxu1 }
 0x4d0   : > { %v732_v50 = vadd.f32 %v731_v49, %v661_v48  ;;  %v902_v51 = vpop.f32.mrb[5].mxu1 }
 0x4d2   : > { %735 = vst.msk [vmem:[%s311_s26] sm:$0xff] %vm328_vm1, %v732_v50 }
 0x4d3   : > { %1021 = shalt.err (!%p1018_p7)
}
 0x4d4   : > { %s1022_s20 = scalar_lea.hbm %s1277_s18, 128  ;;  %s1026_s25 = scalar_lea.hbm %s1328_s8, 1024 }
 0x4d5   : > { %p1023_p8 = scmp.ne.s32.totalorder %s1277_s18, %s1022_s20  ;;  %p1027_p1 = scmp.lt.u32.totalorder %s1277_s18, %s1328_s8 }
 0x4d6   : > { %p1028_p0 = scmp.lt.u32.totalorder %s1026_s25, %s1022_s20  ;;  %p1030_p6 = scmp.lt.u32.totalorder %s1022_s20, %s1277_s18 }
 0x4d7   : > { %p1024_p11 = pnand %p1023_p8, %p1339_p9 }
 0x4d8   : > { %p1029_p5 = por %p1028_p0, %p1027_p1 }
 0x4d9   : > { %p1025_p13 = pneg %p1024_p11 }
 0x4da   : > { %p1031_p10 = por %p1030_p6, %p1029_p5 }
 0x4dc   : > { %p1032_p12 = pnand %p1031_p10, %p1025_p13 }
 0x4de   : > { %1035 = shalt.err (!%p1032_p12)
}
 0x4df   : > { %925 = dma.vmem_to_hbm [thread:$0]  (%p1339_p9), %s1279_s10, 128, %s1277_s18, %s737_s21  }
 0x4e0 PF: > { %p937_p2 = scmp.ge.s32.totalorder %s1074_s30, 2  ;;  %s762_s13 = sand.u32 1, %s1062_s27  }
 0x4e1   : > { %p1340_p3 = scmp.ne.s32.totalorder %s1333_s16, 0  ;;  %s763_s9 = scalar_lea.sflag [#allocation4], %s762_s13 }
 0x4e3   : > { %p932_p4 = pnand %p937_p2, %p1340_p3 }
 0x4e5   : > { %1057 = dma.done.wait (!%p932_p4), %s763_s9, 128  }
 0x4e6   : > { %1059 = vsyncadd (!%p932_p4), %s763_s9, 4294967168  ;;  %p19_p7 = scmp.ge.s32.totalorder %s1153_s11, 10   ;;  %s1341_s27 = smov %s1066_s28 }
 0x4e7   : > { %s1342_s28 = smov %s1070_s29  ;;  %s1343_s29 = smov %s1164_s14 }
 0x4e8   : > { %s1344_s30 = smov %s1153_s11  ;;  %21 = sbr.rel (!%p19_p7) target bundleno = 4 (0x4), region = 92 }
 0x4ef   :  { %768 = vsyncpa [#allocation3], 1 }
 0x4f0   :  { %770 = vsyncpa [#allocation3 + $0x1], 1 }
 0x4f1   :  { %771 = vsyncpa [#allocation4], 1 }
 0x4f2   :  { %773 = vsyncpa [#allocation4 + $0x1], 1 }

</bundles_post_ra>
